<compile_context>
chip_gen: v5e
topology: v5e:2x2
jax: 0.10.0
libtpu: 0.0.40
codegen_flags: <defaults>
</compile_context>

<pallas_src>
import jax
import jax.numpy as jnp
from jax.experimental import pallas as pl
from jax.experimental.pallas import tpu as pltpu

LANE = 128       # lane width (last-dim alignment)
SUBLANE = 8      # sublane width (second-to-last-dim alignment)
TB_CAP = 2048    # upper bound on batch tile rows


def _round_up(x, m):
    return ((x + m - 1) // m) * m


# --------------------------------------------------------------------------- #
# VMEM budgeting
# --------------------------------------------------------------------------- #
def _vmem_budget_bytes():
    """Generation-aware VMEM budget: ~85% of physical capacity (leaves headroom
    for compiler-internal scratch). Falls back to a v7x-safe 64 MiB capacity."""
    cap = None
    try:
        info = pltpu.get_tpu_info()
        cap = getattr(info, "vmem_capacity_bytes", None)
    except Exception:
        cap = None
    if not cap:
        cap = 64 << 20
    return int(cap * 0.85)


def _choose_tb(b_pad, bytes_per_row, resident_bytes, vmem_budget):
    """Largest sublane-aligned batch tile fitting the budget; None if params alone
    do not fit. Keeps >=2 grid steps when the batch allows (v7x megacore)."""
    headroom = 4 << 20
    avail = vmem_budget - resident_bytes - headroom
    if avail < bytes_per_row * SUBLANE:
        return None
    tb = min(avail // bytes_per_row, TB_CAP, b_pad)
    tb = max(SUBLANE, (tb // SUBLANE) * SUBLANE)
    if tb >= b_pad and b_pad >= 4 * SUBLANE:
        # split into >=2 grid steps so ("parallel",) can use both TensorCores
        tb = _round_up((b_pad + 1) // 2, SUBLANE)
    return int(tb)


# --------------------------------------------------------------------------- #
# Kernels
# --------------------------------------------------------------------------- #
def _build_fused_kernel(layer_has_zca):
    """One kernel for the whole MLP. The layer loop is statically unrolled; the
    chained activation stays on-chip in bf16 between layers."""
    n_layers = len(layer_has_zca)

    def kernel(*refs):
        it = iter(refs)
        x_ref = next(it)
        params = []
        for has_zca in layer_has_zca:
            wt_ref = next(it)
            mean_ref = next(it)
            c_ref = next(it) if has_zca else None
            params.append((wt_ref, mean_ref, c_ref))
        out_refs = [next(it) for _ in range(n_layers)]

        h = x_ref[...]                                            # bf16 (tb, Din0_pad)
        for (wt_ref, mean_ref, c_ref), o_ref in zip(params, out_refs):
            z = jnp.dot(h, wt_ref[...], preferred_element_type=jnp.float32)
            z = z - mean_ref[...]                                 # f32, broadcast (1, Dout)
            if c_ref is not None:                                 # eval-mode ZCA whitening
                z = jnp.dot(z.astype(jnp.bfloat16), c_ref[...],
                            preferred_element_type=jnp.float32)
            # activation = identity (module default); dropout = identity (eval mode)
            o_ref[...] = z.astype(o_ref.dtype)                    # deep_copy_list entry
            h = z.astype(jnp.bfloat16)                            # chain stays on-chip

    return kernel


def _build_layer_kernel(has_zca):
    """Fallback single-layer kernel: f32 deep-copy output + bf16 chained output."""
    def kernel(*refs):
        if has_zca:
            x_ref, wt_ref, mean_ref, c_ref, out_ref, nxt_ref = refs
        else:
            x_ref, wt_ref, mean_ref, out_ref, nxt_ref = refs
            c_ref = None
        z = jnp.dot(x_ref[...], wt_ref[...], preferred_element_type=jnp.float32)
        z = z - mean_ref[...]
        if c_ref is not None:
            z = jnp.dot(z.astype(jnp.bfloat16), c_ref[...],
                        preferred_element_type=jnp.float32)
        out_ref[...] = z.astype(out_ref.dtype)
        nxt_ref[...] = z.astype(nxt_ref.dtype)
    return kernel


# --------------------------------------------------------------------------- #
# Parameter prep
# --------------------------------------------------------------------------- #
def init_mlp_params(key, input_units, layer_units, output_units, trained_zca=True):
    """Synthetic parameters matching MLPModel.__init__ shapes.

    trained_zca=True perturbs the ZCA running stats away from (0, I) so the
    whitening matmul path is exercised; trained_zca=False matches the module's
    __init__ values (mean=0, C=I), for which the whitening matmul is skipped."""
    dims_in = [input_units] + list(layer_units)
    dims_out = list(layer_units) + [output_units]
    weights, means, cs = [], [], []
    for din, dout in zip(dims_in, dims_out):
        key, wkey, mkey, ckey = jax.random.split(key, 4)
        bound = 1.0 / (float(din) ** 0.5)
        w = jax.random.uniform(wkey, (dout, din), jnp.float32, -bound, bound)
        weights.append(w)
        if trained_zca:
            means.append(0.1 * jax.random.normal(mkey, (1, dout), jnp.float32))
            cs.append(jnp.eye(dout, dtype=jnp.float32)
                      + 0.05 * jax.random.normal(ckey, (dout, dout), jnp.float32))
        else:
            means.append(jnp.zeros((1, dout), jnp.float32))
            cs.append(jnp.eye(dout, dtype=jnp.float32))
    return weights, means, cs


def prepare_params(weights, zca_means, zca_cs, input_units):
    """Pad feature dims to multiples of 128, pre-transpose weights and cast the
    matmul operands to bf16 ONCE. Layers whose ZCA stats are the init values
    (mean=0, C=I) drop the C operand entirely."""
    prepped = []
    din_pad = _round_up(input_units, LANE)
    for w, m, c in zip(weights, zca_means, zca_cs):
        dout, din = w.shape
        dout_pad = _round_up(dout, LANE)
        wt = jnp.zeros((din_pad, dout_pad), jnp.float32).at[:din, :dout].set(w.T)
        mp = jnp.zeros((1, dout_pad), jnp.float32).at[:, :dout].set(m)
        has_zca = bool(jnp.any(m != 0)) or bool(
            jnp.any(c != jnp.eye(dout, dtype=c.dtype)))
        cp = None
        if has_zca:
            cp = jnp.zeros((dout_pad, dout_pad), jnp.float32).at[:dout, :dout].set(c)
            cp = cp.astype(jnp.bfloat16)
        prepped.append({"wt": wt.astype(jnp.bfloat16), "mean": mp, "c": cp,
                        "dout": dout})
        din_pad = dout_pad  # activations stay padded between layers
    return prepped


# --------------------------------------------------------------------------- #
# Forward passes
# --------------------------------------------------------------------------- #
def _fused_forward(x, prepped, tb, vmem_limit):
    B, fin = x.shape
    Bp = _round_up(B, tb)
    din0_pad = prepped[0]["wt"].shape[0]
    xp = jnp.zeros((Bp, din0_pad), jnp.bfloat16).at[:B, :fin].set(
        x.astype(jnp.bfloat16))

    in_specs = [pl.BlockSpec((tb, din0_pad), lambda i: (i, 0))]
    operands = [xp]
    layer_has_zca = []
    out_shapes, out_specs = [], []
    flops = 0
    bytes_accessed = xp.size * 2
    for p in prepped:
        din_pad, dout_pad = p["wt"].shape
        in_specs.append(pl.BlockSpec((din_pad, dout_pad), lambda i: (0, 0)))
        operands.append(p["wt"])
        in_specs.append(pl.BlockSpec((1, dout_pad), lambda i: (0, 0)))
        operands.append(p["mean"])
        has_zca = p["c"] is not None
        if has_zca:
            in_specs.append(pl.BlockSpec((dout_pad, dout_pad), lambda i: (0, 0)))
            operands.append(p["c"])
        layer_has_zca.append(has_zca)
        out_shapes.append(jax.ShapeDtypeStruct((Bp, dout_pad), jnp.float32))
        out_specs.append(pl.BlockSpec((tb, dout_pad), lambda i: (i, 0)))
        flops += 2 * Bp * din_pad * dout_pad
        if has_zca:
            flops += 2 * Bp * dout_pad * dout_pad
        bytes_accessed += p["wt"].size * 2 + p["mean"].size * 4
        if has_zca:
            bytes_accessed += p["c"].size * 2
        bytes_accessed += Bp * dout_pad * 4

    outs = pl.pallas_call(
        _build_fused_kernel(layer_has_zca),
        out_shape=tuple(out_shapes),
        grid=(Bp // tb,),
        in_specs=in_specs,
        out_specs=tuple(out_specs),
        compiler_params=pltpu.CompilerParams(
            dimension_semantics=("parallel",),          # megacore split on v7x
            vmem_limit_bytes=int(vmem_limit)),
        cost_estimate=pl.CostEstimate(flops=int(flops), transcendentals=0,
                                      bytes_accessed=int(bytes_accessed)),
    )(*operands)

    # Un-pad only at the final consumer (outside the hot path).
    return [o[:B, :p["dout"]] for o, p in zip(outs, prepped)]


def _layerwise_forward(x, prepped, vmem_budget):
    """Fallback: one pallas_call per layer (params still fully VMEM-resident,
    activation chained through HBM in bf16). Used when the fused working set
    does not fit the VMEM budget."""
    B, fin = x.shape
    deep_copy_list = []
    h = x.astype(jnp.bfloat16)
    cur_width = fin
    for p in prepped:
        din_pad, dout_pad = p["wt"].shape
        has_zca = p["c"] is not None
        resident = 2 * (p["wt"].size * 2 + p["mean"].size * 4
                        + (p["c"].size * 2 if has_zca else 0))
        bytes_per_row = 2 * (din_pad * 2 + dout_pad * 4 + dout_pad * 2) + dout_pad * 12
        b_pad = _round_up(max(B, SUBLANE), SUBLANE)
        tb = _choose_tb(b_pad, bytes_per_row, resident, vmem_budget)
        if tb is None:
            # TODO(synk): K/N-tiled accumulator path for layers whose params alone
            #             exceed the per-generation VMEM budget.
            raise NotImplementedError("single layer exceeds the VMEM budget")
        Bp = _round_up(B, tb)
        xp = jnp.zeros((Bp, din_pad), jnp.bfloat16).at[:B, :cur_width].set(
            h[:B, :cur_width])

        in_specs = [pl.BlockSpec((tb, din_pad), lambda i: (i, 0)),
                    pl.BlockSpec((din_pad, dout_pad), lambda i: (0, 0)),
                    pl.BlockSpec((1, dout_pad), lambda i: (0, 0))]
        operands = [xp, p["wt"], p["mean"]]
        if has_zca:
            in_specs.append(pl.BlockSpec((dout_pad, dout_pad), lambda i: (0, 0)))
            operands.append(p["c"])

        out_f32, h_next = pl.pallas_call(
            _build_layer_kernel(has_zca),
            out_shape=(jax.ShapeDtypeStruct((Bp, dout_pad), jnp.float32),
                       jax.ShapeDtypeStruct((Bp, dout_pad), jnp.bfloat16)),
            grid=(Bp // tb,),
            in_specs=in_specs,
            out_specs=(pl.BlockSpec((tb, dout_pad), lambda i: (i, 0)),
                       pl.BlockSpec((tb, dout_pad), lambda i: (i, 0))),
            compiler_params=pltpu.CompilerParams(
                dimension_semantics=("parallel",),
                vmem_limit_bytes=int(vmem_budget)),
        )(*operands)

        deep_copy_list.append(out_f32[:B, :p["dout"]])
        h = h_next
        cur_width = p["dout"]
    return deep_copy_list


def mlp_forward(x, prepped, vmem_budget=None):
    """Mirror of MLPModel.forward(x, training=False) with default kwargs.
    Returns the per-layer activations (deep_copy_list) at their original widths."""
    B, _ = x.shape
    if vmem_budget is None:
        vmem_budget = _vmem_budget_bytes()

    din0_pad = prepped[0]["wt"].shape[0]
    dout_pads = [p["wt"].shape[1] for p in prepped]

    resident = 0
    for p in prepped:
        resident += p["wt"].size * 2 + p["mean"].size * 4
        if p["c"] is not None:
            resident += p["c"].size * 2
    resident *= 2  # Pallas allocates double buffers even for constant-index blocks

    # double-buffered pipelined tiles (bf16 input + f32 outputs) + live working set
    bytes_per_row = 2 * (din0_pad * 2 + sum(d * 4 for d in dout_pads))
    bytes_per_row += max(dout_pads) * 12

    b_pad = _round_up(max(B, SUBLANE), SUBLANE)
    tb = _choose_tb(b_pad, bytes_per_row, resident, vmem_budget)
    if tb is not None:
        return _fused_forward(x, prepped, tb, vmem_budget)
    return _layerwise_forward(x, prepped, vmem_budget)


def mlp_forward_ref(x, weights, zca_means, zca_cs):
    """Pure-JAX reference with the same bf16-input / f32-accumulate numerics."""
    outs = []
    for w, m, c in zip(weights, zca_means, zca_cs):
        xb = x.astype(jnp.bfloat16).astype(jnp.float32)
        wb = w.astype(jnp.bfloat16).astype(jnp.float32)
        h = xb @ wb.T - m
        skip = bool(jnp.all(m == 0)) and bool(
            jnp.all(c == jnp.eye(c.shape[0], dtype=c.dtype)))
        if skip:
            x = h
        else:
            cb = c.astype(jnp.bfloat16).astype(jnp.float32)
            x = h.astype(jnp.bfloat16).astype(jnp.float32) @ cb
        outs.append(x)
    return outs


if __name__ == "__main__":
    # small shapes consistent with the module
    batch = 8
    input_units = 16
    layer_units = [32, 64]
    output_units = 8

    key = jax.random.PRNGKey(0)
    key, xkey = jax.random.split(key)
    x = jax.random.normal(xkey, (batch, input_units), jnp.float32)

    # trained_zca=True exercises the fused ZCA path; False exercises the skip path.
    for trained in (True, False):
        weights, zca_means, zca_cs = init_mlp_params(
            key, input_units, layer_units, output_units, trained_zca=trained)
        prepped = prepare_params(weights, zca_means, zca_cs, input_units)

        outs = mlp_forward(x, prepped)
        outs = [jax.block_until_ready(o) for o in outs]

        refs = mlp_forward_ref(x, weights, zca_means, zca_cs)
        for o, r in zip(outs, refs):
            assert o.shape == r.shape
            assert jnp.allclose(o, r, atol=2e-2, rtol=2e-2), "mismatch vs reference"

    print("KERNEL_OK")
</pallas_src>

<mosaic_0001>
module attributes {stable_mosaic.version = 11 : i64} {
  func.func @kernel(%arg0: i32, %arg1: memref<8x128xbf16, #tpu.memory_space<vmem>>, %arg2: memref<128x128xbf16, #tpu.memory_space<vmem>>, %arg3: memref<1x128xf32, #tpu.memory_space<vmem>>, %arg4: memref<128x128xbf16, #tpu.memory_space<vmem>>, %arg5: memref<128x128xbf16, #tpu.memory_space<vmem>>, %arg6: memref<1x128xf32, #tpu.memory_space<vmem>>, %arg7: memref<128x128xbf16, #tpu.memory_space<vmem>>, %arg8: memref<128x128xbf16, #tpu.memory_space<vmem>>, %arg9: memref<1x128xf32, #tpu.memory_space<vmem>>, %arg10: memref<128x128xbf16, #tpu.memory_space<vmem>>, %arg11: memref<8x128xf32, #tpu.memory_space<vmem>>, %arg12: memref<8x128xf32, #tpu.memory_space<vmem>>, %arg13: memref<8x128xf32, #tpu.memory_space<vmem>>) attributes {dimension_semantics = [#tpu.dimension_semantics<parallel>], iteration_bounds = array<i64: 1>, scalar_prefetch = 0 : i64, scratch_operands = 0 : i64, tpu.core_type = #tpu.core_type<tc>, window_params = [{transform_indices = @transform_0, window_bounds = array<i64: 8, 128>}, {pipeline_mode = #tpu.pipeline_mode<synchronous>, transform_indices = @transform_1, window_bounds = array<i64: 128, 128>}, {pipeline_mode = #tpu.pipeline_mode<synchronous>, transform_indices = @transform_2, window_bounds = array<i64: 1, 128>}, {pipeline_mode = #tpu.pipeline_mode<synchronous>, transform_indices = @transform_3, window_bounds = array<i64: 128, 128>}, {pipeline_mode = #tpu.pipeline_mode<synchronous>, transform_indices = @transform_4, window_bounds = array<i64: 128, 128>}, {pipeline_mode = #tpu.pipeline_mode<synchronous>, transform_indices = @transform_5, window_bounds = array<i64: 1, 128>}, {pipeline_mode = #tpu.pipeline_mode<synchronous>, transform_indices = @transform_6, window_bounds = array<i64: 128, 128>}, {pipeline_mode = #tpu.pipeline_mode<synchronous>, transform_indices = @transform_7, window_bounds = array<i64: 128, 128>}, {pipeline_mode = #tpu.pipeline_mode<synchronous>, transform_indices = @transform_8, window_bounds = array<i64: 1, 128>}, {pipeline_mode = #tpu.pipeline_mode<synchronous>, transform_indices = @transform_9, window_bounds = array<i64: 128, 128>}, {transform_indices = @transform_10, window_bounds = array<i64: 8, 128>}, {transform_indices = @transform_11, window_bounds = array<i64: 8, 128>}, {transform_indices = @transform_12, window_bounds = array<i64: 8, 128>}]} {
    %c0 = arith.constant 0 : index
    %c0_0 = arith.constant 0 : index
    %0 = vector.load %arg1[%c0, %c0_0] : memref<8x128xbf16, #tpu.memory_space<vmem>>, vector<8x128xbf16>
    %c0_1 = arith.constant 0 : index
    %c0_2 = arith.constant 0 : index
    %1 = vector.load %arg2[%c0_1, %c0_2] : memref<128x128xbf16, #tpu.memory_space<vmem>>, vector<128x128xbf16>
    %cst = arith.constant dense<0.000000e+00> : vector<8x128xf32>
    %2 = tpu.matmul %0, %1, %cst {dimension_numbers = #tpu.dot_dimension_numbers<[1], [0], [0], [1], [0, 0, 1, 1], [], []>} : vector<8x128xbf16>, vector<128x128xbf16>, vector<8x128xf32> -> vector<8x128xf32>
    %c0_3 = arith.constant 0 : index
    %c0_4 = arith.constant 0 : index
    %3 = vector.load %arg3[%c0_3, %c0_4] : memref<1x128xf32, #tpu.memory_space<vmem>>, vector<1x128xf32>
    %4 = vector.broadcast %3 : vector<1x128xf32> to vector<8x128xf32>
    %5 = arith.subf %2, %4 : vector<8x128xf32>
    %6 = arith.truncf %5 : vector<8x128xf32> to vector<8x128xbf16>
    %c0_5 = arith.constant 0 : index
    %c0_6 = arith.constant 0 : index
    %7 = vector.load %arg4[%c0_5, %c0_6] : memref<128x128xbf16, #tpu.memory_space<vmem>>, vector<128x128xbf16>
    %cst_7 = arith.constant dense<0.000000e+00> : vector<8x128xf32>
    %8 = tpu.matmul %6, %7, %cst_7 {dimension_numbers = #tpu.dot_dimension_numbers<[1], [0], [0], [1], [0, 0, 1, 1], [], []>} : vector<8x128xbf16>, vector<128x128xbf16>, vector<8x128xf32> -> vector<8x128xf32>
    %c0_8 = arith.constant 0 : index
    %c0_9 = arith.constant 0 : index
    %9 = vector.load %arg11[%c0_8, %c0_9] : memref<8x128xf32, #tpu.memory_space<vmem>>, vector<8x128xf32>
    tpu.vector_store %arg11[%c0_8, %c0_9], %8 {strides = array<i32>} : memref<8x128xf32, #tpu.memory_space<vmem>>, vector<8x128xf32>,
    %10 = arith.truncf %8 : vector<8x128xf32> to vector<8x128xbf16>
    %c0_10 = arith.constant 0 : index
    %c0_11 = arith.constant 0 : index
    %11 = vector.load %arg5[%c0_10, %c0_11] : memref<128x128xbf16, #tpu.memory_space<vmem>>, vector<128x128xbf16>
    %cst_12 = arith.constant dense<0.000000e+00> : vector<8x128xf32>
    %12 = tpu.matmul %10, %11, %cst_12 {dimension_numbers = #tpu.dot_dimension_numbers<[1], [0], [0], [1], [0, 0, 1, 1], [], []>} : vector<8x128xbf16>, vector<128x128xbf16>, vector<8x128xf32> -> vector<8x128xf32>
    %c0_13 = arith.constant 0 : index
    %c0_14 = arith.constant 0 : index
    %13 = vector.load %arg6[%c0_13, %c0_14] : memref<1x128xf32, #tpu.memory_space<vmem>>, vector<1x128xf32>
    %14 = vector.broadcast %13 : vector<1x128xf32> to vector<8x128xf32>
    %15 = arith.subf %12, %14 : vector<8x128xf32>
    %16 = arith.truncf %15 : vector<8x128xf32> to vector<8x128xbf16>
    %c0_15 = arith.constant 0 : index
    %c0_16 = arith.constant 0 : index
    %17 = vector.load %arg7[%c0_15, %c0_16] : memref<128x128xbf16, #tpu.memory_space<vmem>>, vector<128x128xbf16>
    %cst_17 = arith.constant dense<0.000000e+00> : vector<8x128xf32>
    %18 = tpu.matmul %16, %17, %cst_17 {dimension_numbers = #tpu.dot_dimension_numbers<[1], [0], [0], [1], [0, 0, 1, 1], [], []>} : vector<8x128xbf16>, vector<128x128xbf16>, vector<8x128xf32> -> vector<8x128xf32>
    %c0_18 = arith.constant 0 : index
    %c0_19 = arith.constant 0 : index
    %19 = vector.load %arg12[%c0_18, %c0_19] : memref<8x128xf32, #tpu.memory_space<vmem>>, vector<8x128xf32>
    tpu.vector_store %arg12[%c0_18, %c0_19], %18 {strides = array<i32>} : memref<8x128xf32, #tpu.memory_space<vmem>>, vector<8x128xf32>,
    %20 = arith.truncf %18 : vector<8x128xf32> to vector<8x128xbf16>
    %c0_20 = arith.constant 0 : index
    %c0_21 = arith.constant 0 : index
    %21 = vector.load %arg8[%c0_20, %c0_21] : memref<128x128xbf16, #tpu.memory_space<vmem>>, vector<128x128xbf16>
    %cst_22 = arith.constant dense<0.000000e+00> : vector<8x128xf32>
    %22 = tpu.matmul %20, %21, %cst_22 {dimension_numbers = #tpu.dot_dimension_numbers<[1], [0], [0], [1], [0, 0, 1, 1], [], []>} : vector<8x128xbf16>, vector<128x128xbf16>, vector<8x128xf32> -> vector<8x128xf32>
    %c0_23 = arith.constant 0 : index
    %c0_24 = arith.constant 0 : index
    %23 = vector.load %arg9[%c0_23, %c0_24] : memref<1x128xf32, #tpu.memory_space<vmem>>, vector<1x128xf32>
    %24 = vector.broadcast %23 : vector<1x128xf32> to vector<8x128xf32>
    %25 = arith.subf %22, %24 : vector<8x128xf32>
    %26 = arith.truncf %25 : vector<8x128xf32> to vector<8x128xbf16>
    %c0_25 = arith.constant 0 : index
    %c0_26 = arith.constant 0 : index
    %27 = vector.load %arg10[%c0_25, %c0_26] : memref<128x128xbf16, #tpu.memory_space<vmem>>, vector<128x128xbf16>
    %cst_27 = arith.constant dense<0.000000e+00> : vector<8x128xf32>
    %28 = tpu.matmul %26, %27, %cst_27 {dimension_numbers = #tpu.dot_dimension_numbers<[1], [0], [0], [1], [0, 0, 1, 1], [], []>} : vector<8x128xbf16>, vector<128x128xbf16>, vector<8x128xf32> -> vector<8x128xf32>
    %c0_28 = arith.constant 0 : index
    %c0_29 = arith.constant 0 : index
    %29 = vector.load %arg13[%c0_28, %c0_29] : memref<8x128xf32, #tpu.memory_space<vmem>>, vector<8x128xf32>
    tpu.vector_store %arg13[%c0_28, %c0_29], %28 {strides = array<i32>} : memref<8x128xf32, #tpu.memory_space<vmem>>, vector<8x128xf32>,
    return
  }
  func.func @transform_0(%arg0: i32) -> (i32, i32) {
    %c0_i32 = arith.constant 0 : i32
    %c0_i32_0 = arith.constant 0 : i32
    return %arg0, %c0_i32 : i32, i32
  }
  func.func @transform_1(%arg0: i32) -> (i32, i32) {
    %c0_i32 = arith.constant 0 : i32
    %c0_i32_0 = arith.constant 0 : i32
    %c0_i32_1 = arith.constant 0 : i32
    return %c0_i32, %c0_i32_0 : i32, i32
  }
  func.func @transform_2(%arg0: i32) -> (i32, i32) {
    %c0_i32 = arith.constant 0 : i32
    %c0_i32_0 = arith.constant 0 : i32
    %c0_i32_1 = arith.constant 0 : i32
    return %c0_i32, %c0_i32_0 : i32, i32
  }
  func.func @transform_3(%arg0: i32) -> (i32, i32) {
    %c0_i32 = arith.constant 0 : i32
    %c0_i32_0 = arith.constant 0 : i32
    %c0_i32_1 = arith.constant 0 : i32
    return %c0_i32, %c0_i32_0 : i32, i32
  }
  func.func @transform_4(%arg0: i32) -> (i32, i32) {
    %c0_i32 = arith.constant 0 : i32
    %c0_i32_0 = arith.constant 0 : i32
    %c0_i32_1 = arith.constant 0 : i32
    return %c0_i32, %c0_i32_0 : i32, i32
  }
  func.func @transform_5(%arg0: i32) -> (i32, i32) {
    %c0_i32 = arith.constant 0 : i32
    %c0_i32_0 = arith.constant 0 : i32
    %c0_i32_1 = arith.constant 0 : i32
    return %c0_i32, %c0_i32_0 : i32, i32
  }
  func.func @transform_6(%arg0: i32) -> (i32, i32) {
    %c0_i32 = arith.constant 0 : i32
    %c0_i32_0 = arith.constant 0 : i32
    %c0_i32_1 = arith.constant 0 : i32
    return %c0_i32, %c0_i32_0 : i32, i32
  }
  func.func @transform_7(%arg0: i32) -> (i32, i32) {
    %c0_i32 = arith.constant 0 : i32
    %c0_i32_0 = arith.constant 0 : i32
    %c0_i32_1 = arith.constant 0 : i32
    return %c0_i32, %c0_i32_0 : i32, i32
  }
  func.func @transform_8(%arg0: i32) -> (i32, i32) {
    %c0_i32 = arith.constant 0 : i32
    %c0_i32_0 = arith.constant 0 : i32
    %c0_i32_1 = arith.constant 0 : i32
    return %c0_i32, %c0_i32_0 : i32, i32
  }
  func.func @transform_9(%arg0: i32) -> (i32, i32) {
    %c0_i32 = arith.constant 0 : i32
    %c0_i32_0 = arith.constant 0 : i32
    %c0_i32_1 = arith.constant 0 : i32
    return %c0_i32, %c0_i32_0 : i32, i32
  }
  func.func @transform_10(%arg0: i32) -> (i32, i32) {
    %c0_i32 = arith.constant 0 : i32
    %c0_i32_0 = arith.constant 0 : i32
    return %arg0, %c0_i32 : i32, i32
  }
  func.func @transform_11(%arg0: i32) -> (i32, i32) {
    %c0_i32 = arith.constant 0 : i32
    %c0_i32_0 = arith.constant 0 : i32
    return %arg0, %c0_i32 : i32, i32
  }
  func.func @transform_12(%arg0: i32) -> (i32, i32) {
    %c0_i32 = arith.constant 0 : i32
    %c0_i32_0 = arith.constant 0 : i32
    return %arg0, %c0_i32 : i32, i32
  }
}

</mosaic_0001>

<bundles_post_ra>
// kernel: tpu_custom_call.1
= control target key start
LH: loop header
LB: loop body
LE: loop exit
PB: predicated region body
PF: predicated region fallthrough
CT: control target
= control target key end

     0   :  { %18 = vsyncpa [#allocation3], 0  ;;  %s1325_s0 = inlined_call_operand.hbm [shape: bf16[8,128], index: 0, kind: input, shape index: {}]   ;;  %s1326_s1 = inlined_call_operand.hbm [shape: bf16[128,128], index: 1, kind: input, shape index: {}]   ;;  %s1327_s2 = inlined_call_operand.vmem [shape: f32[1,128], index: 2, kind: input, shape index: {}]   ;;  %s1328_s3 = inlined_call_operand.hbm [shape: bf16[128,128], index: 3, kind: input, shape index: {}]   ;;  %s1329_s4 = inlined_call_operand.hbm [shape: bf16[128,128], index: 4, kind: input, shape index: {}]   ;;  %s1330_s5 = inlined_call_operand.vmem [shape: f32[1,128], index: 5, kind: input, shape index: {}]   ;;  %s1331_s6 = inlined_call_operand.hbm [shape: bf16[128,128], index: 6, kind: input, shape index: {}]   ;;  %s1332_s7 = inlined_call_operand.hbm [shape: bf16[128,128], index: 7, kind: input, shape index: {}]   ;;  %s1333_s8 = inlined_call_operand.vmem [shape: f32[1,128], index: 8, kind: input, shape index: {}]   ;;  %s1334_s9 = inlined_call_operand.hbm [shape: bf16[128,128], index: 9, kind: input, shape index: {}]   ;;  %s1335_s10 = inlined_call_operand.hbm [shape: f32[8,128], index: 10, kind: output, shape index: {0}]   ;;  %s1336_s11 = inlined_call_operand.hbm [shape: f32[8,128], index: 11, kind: output, shape index: {1}]   ;;  %s1337_s12 = inlined_call_operand.hbm [shape: f32[8,128], index: 12, kind: output, shape index: {2}]  }
   0x1   :  { %19 = vsyncpa [#allocation6], 0 }
   0x2   :  { %20 = vsyncpa [#allocation9], 0 }
   0x3   :  { %21 = vsyncpa [#allocation12], 0 }
   0x4   :  { %22 = vsyncpa [#allocation4], 0  ;;  %s39_s23 = sshll.u32 %s1326_s1, 4  ;;  %s40_s23 = int_to_ptr.hbm [resolvable:$true] %s39_s23 }
   0x5   :  { %23 = vsyncpa [#allocation16], 0  ;;  %s1191_s24 = smov [#allocation5]   ;;  %s67_s28 = sshll.u32 %s1329_s4, 4  ;;  %s68_s28 = int_to_ptr.hbm [resolvable:$true] %s67_s28 }
   0x6   :  { %s41_s25 = sshll.u32 %s1191_s24, 4  ;;  %s1192_s29 = smov 64   ;;  %s42_s25 = int_to_ptr.vmem [resolvable:$true] %s41_s25 }
   0x7   :  { %s1193_s30 = smov 4   ;;  %s1194_s13 = smov [#allocation8]  }
   0x8   :  { %47 = dma.hbm_to_vmem [thread:$0]  %s40_s23, 1024, %s42_s25, [#allocation6], %s1192_s29, %s1192_s29, %s1193_s30  }
   0x9   :  { %s69_s14 = sshll.u32 %s1194_s13, 4  ;;  %s95_s16 = sshll.u32 %s1332_s7, 4  ;;  %s70_s14 = int_to_ptr.vmem [resolvable:$true] %s69_s14  ;;  %s96_s16 = int_to_ptr.hbm [resolvable:$true] %s95_s16 }
   0xa   :  { %75 = dma.hbm_to_vmem [thread:$0]  %s68_s28, 1024, %s70_s14, [#allocation9], %s1192_s29, %s1192_s29, %s1193_s30  }
   0xb   :  { %s29_s18 = sshll.u32 %s1325_s0, 4  ;;  %s1195_s19 = smov [#allocation11]   ;;  %s30_s18 = int_to_ptr.hbm [resolvable:$true] %s29_s18 }
   0xc   :  { %s97_s20 = sshll.u32 %s1195_s19, 4  ;;  %s1196_s21 = smov [#allocation2]   ;;  %s98_s20 = int_to_ptr.vmem [resolvable:$true] %s97_s20 }
   0xd   :  { %103 = dma.hbm_to_vmem [thread:$0]  %s96_s16, 1024, %s98_s20, [#allocation12], %s1192_s29, %s1192_s29, %s1193_s30  }
   0xe   :  { %s31_s7 = sshll.u32 %s1196_s21, 4  ;;  %s54_s24 = sshll.u32 %s1328_s3, 4  ;;  %s32_s7 = int_to_ptr.vmem [resolvable:$true] %s31_s7  ;;  %s55_s24 = int_to_ptr.hbm [resolvable:$true] %s54_s24 }
   0xf   :  { %34 = dma.hbm_to_vmem [thread:$0]  %s30_s18, 64, %s32_s7, [#allocation3]  }
  0x10   :  { %s82_s0 = sshll.u32 %s1331_s6, 4  ;;  %s1197_s27 = smov [#allocation7]   ;;  %s83_s0 = int_to_ptr.hbm [resolvable:$true] %s82_s0 }
  0x11   :  { %s56_s28 = sshll.u32 %s1197_s27, 4  ;;  %s1198_s13 = smov [#allocation10]   ;;  %s57_s28 = int_to_ptr.vmem [resolvable:$true] %s56_s28 }
  0x12   :  { %62 = dma.hbm_to_vmem [thread:$0]  %s55_s24, 1024, %s57_s28, [#allocation6], %s1192_s29, %s1192_s29, %s1193_s30  }
  0x13   :  { %s84_s14 = sshll.u32 %s1198_s13, 4  ;;  %s110_s3 = sshll.u32 %s1334_s9, 4  ;;  %s85_s14 = int_to_ptr.vmem [resolvable:$true] %s84_s14  ;;  %s111_s3 = int_to_ptr.hbm [resolvable:$true] %s110_s3 }
  0x14   :  { %90 = dma.hbm_to_vmem [thread:$0]  %s83_s0, 1024, %s85_s14, [#allocation9], %s1192_s29, %s1192_s29, %s1193_s30  }
  0x15   :  { %s1199_s6 = smov [#allocation13]  }
  0x16   :  { %s112_s16 = sshll.u32 %s1199_s6, 4  ;;  %s113_s16 = int_to_ptr.vmem [resolvable:$true] %s112_s16 }
  0x17   :  { %118 = dma.hbm_to_vmem [thread:$0]  %s111_s3, 1024, %s113_s16, [#allocation12], %s1192_s29, %s1192_s29, %s1193_s30  }
  0x18   :  { %1179 = dma.done.wait [#allocation3], 64  }
  0x19   :  { %1180 = vsyncadd [#allocation3], 4294967232 }
  0x1a   :  { %1181 = dma.done.wait [#allocation6], 2048  }
  0x1b   :  { %1182 = vsyncadd [#allocation6], 4294965248 }
  0x1c   :  { %1183 = dma.done.wait [#allocation9], 2048  }
  0x1d   :  { %1184 = vsyncadd [#allocation9], 4294965248 }
  0x1e   :  { %1185 = dma.done.wait [#allocation12], 2048  }
  0x1f   :  { %1186 = vsyncadd [#allocation12], 4294965248  ;;  %v883_v0 = vld [vmem:[#allocation5 + $0x38] sm:$0xff]  ;;  %v882_v1 = vld [vmem:[#allocation5 + $0x30] sm:$0xff]  ;;  %s651_s19 = sshll.u32 %s1336_s11, 4  ;;  %s1200_s20 = smov [#allocation15]   ;;  %s652_s19 = int_to_ptr.hbm [resolvable:$true] %s651_s19 }
  0x20   :  { %212 = vmatpush.bf16.msra.mxu0 %v883_v0  ;;  %v891_v2 = vld [vmem:[#allocation7 + $0x38] sm:$0xff]  ;;  %v890_v3 = vld [vmem:[#allocation7 + $0x30] sm:$0xff]  ;;  %v881_v4 = vld [vmem:[#allocation5 + $0x28] sm:$0xff]  ;;  %s649_s21 = sshll.u32 %s1200_s20, 4  ;;  %s1201_s7 = smov [#allocation14]   ;;  %s650_s21 = int_to_ptr.vmem [resolvable:$true] %s649_s21 }
  0x21   :  { %295 = vmatpush.bf16.msra.mxu1 %v891_v2  ;;  %v889_v5 = vld [vmem:[#allocation7 + $0x28] sm:$0xff]  ;;  %v880_v6 = vld [vmem:[#allocation5 + $0x20] sm:$0xff]  ;;  %v879_v8 = vld [vmem:[#allocation5 + $0x18] sm:$0xff]  ;;  %s638_s22 = sshll.u32 %s1201_s7, 4  ;;  %s1202_s25 = smov [#allocation17]   ;;  %s639_s22 = int_to_ptr.vmem [resolvable:$true] %s638_s22 }
  0x22   :  { %v888_v7 = vld [vmem:[#allocation7 + $0x20] sm:$0xff]  ;;  %v887_v9 = vld [vmem:[#allocation7 + $0x18] sm:$0xff]  ;;  %v878_v10 = vld [vmem:[#allocation5 + $0x10] sm:$0xff]  ;;  %s660_s26 = sshll.u32 %s1202_s25, 4  ;;  %s662_s27 = sshll.u32 %s1337_s12, 4  ;;  %s661_s26 = int_to_ptr.vmem [resolvable:$true] %s660_s26  ;;  %s663_s27 = int_to_ptr.hbm [resolvable:$true] %s662_s27 }
  0x23   :  { %v886_v11 = vld [vmem:[#allocation7 + $0x10] sm:$0xff]  ;;  %v877_v12 = vld [vmem:[#allocation5 + $0x8] sm:$0xff]  ;;  %v876_v14 = vld [vmem:[#allocation5] sm:$0xff] }
  0x24   :  { %213 = vmatpush.bf16.msra.mxu0 %v882_v1  ;;  %v885_v13 = vld [vmem:[#allocation7 + $0x8] sm:$0xff]  ;;  %v147_v15 = vld [vmem:[#allocation2] sm:$0xf]  ;;  %v884_v16 = vld [vmem:[#allocation7] sm:$0xff] }
  0x25   :  { %296 = vmatpush.bf16.msra.mxu1 %v890_v3  ;;  %v899_v17 = vld [vmem:[#allocation8 + $0x38] sm:$0xff]  ;;  %v898_v18 = vld [vmem:[#allocation8 + $0x30] sm:$0xff]  ;;  %v897_v19 = vld [vmem:[#allocation8 + $0x28] sm:$0xff] }
  0x26   :  { %374 = vmatpush.bf16.msra.mxu2 %v899_v17  ;;  %v896_v20 = vld [vmem:[#allocation8 + $0x20] sm:$0xff]  ;;  %v895_v21 = vld [vmem:[#allocation8 + $0x18] sm:$0xff]  ;;  %v894_v22 = vld [vmem:[#allocation8 + $0x10] sm:$0xff] }
  0x27   :  { %v936_v23 = vld [vmem:[%s1327_s2] ss:$0 sm:$0xff]  ;;  %v893_v24 = vld [vmem:[#allocation8 + $0x8] sm:$0xff]  ;;  %v892_v29 = vld [vmem:[#allocation8] sm:$0xff] }
  0x28   :  { %214 = vmatpush.bf16.msra.mxu0 %v881_v4  ;;  %v907_v30 = vld [vmem:[#allocation10 + $0x38] sm:$0xff]  ;;  %v906_v31 = vld [vmem:[#allocation10 + $0x30] sm:$0xff]  ;;  %v905_v32 = vld [vmem:[#allocation10 + $0x28] sm:$0xff] }
  0x29   :  { %297 = vmatpush.bf16.msra.mxu1 %v889_v5  ;;  %457 = vmatpush.bf16.msra.mxu3 %v907_v30  ;;  %v904_v33 = vld [vmem:[#allocation10 + $0x20] sm:$0xff]  ;;  %v903_v34 = vld [vmem:[#allocation10 + $0x18] sm:$0xff]  ;;  %v902_v35 = vld [vmem:[#allocation10 + $0x10] sm:$0xff] }
  0x2a   :  { %375 = vmatpush.bf16.msra.mxu2 %v898_v18  ;;  %v901_v36 = vld [vmem:[#allocation10 + $0x8] sm:$0xff]  ;;  %v900_v40 = vld [vmem:[#allocation10] sm:$0xff]  ;;  %v915_v41 = vld [vmem:[#allocation11 + $0x38] sm:$0xff] }
  0x2b   :  { %v914_v42 = vld [vmem:[#allocation11 + $0x30] sm:$0xff]  ;;  %v913_v43 = vld [vmem:[#allocation11 + $0x28] sm:$0xff]  ;;  %v912_v44 = vld [vmem:[#allocation11 + $0x20] sm:$0xff] }
  0x2c   :  { %215 = vmatpush.bf16.msra.mxu0 %v880_v6  ;;  %v911_v45 = vld [vmem:[#allocation11 + $0x18] sm:$0xff]  ;;  %v910_v46 = vld [vmem:[#allocation11 + $0x10] sm:$0xff]  ;;  %v909_v48 = vld [vmem:[#allocation11 + $0x8] sm:$0xff] }
  0x2d   :  { %298 = vmatpush.bf16.msra.mxu1 %v888_v7  ;;  %458 = vmatpush.bf16.msra.mxu3 %v906_v31  ;;  %v937_v47 = vld [vmem:[%s1330_s5] ss:$0 sm:$0xff]  ;;  %v908_v53 = vld [vmem:[#allocation11] sm:$0xff]  ;;  %v922_v55 = vld [vmem:[#allocation13 + $0x30] sm:$0xff] }
  0x2e   :  { %376 = vmatpush.bf16.msra.mxu2 %v897_v19  ;;  %v923_v54 = vld [vmem:[#allocation13 + $0x38] sm:$0xff]  ;;  %v921_v56 = vld [vmem:[#allocation13 + $0x28] sm:$0xff]  ;;  %v920_v57 = vld [vmem:[#allocation13 + $0x20] sm:$0xff] }
  0x2f   :  { %v919_v58 = vld [vmem:[#allocation13 + $0x18] sm:$0xff]  ;;  %v918_v59 = vld [vmem:[#allocation13 + $0x10] sm:$0xff]  ;;  %v917_v60 = vld [vmem:[#allocation13 + $0x8] sm:$0xff] }
  0x30   :  { %216 = vmatpush.bf16.msra.mxu0 %v879_v8  ;;  %v916_v0 = vld [vmem:[#allocation13] sm:$0xff]  ;;  %v938_v1 = vld [vmem:[%s1333_s8] ss:$0 sm:$0xff]  ;;  %s640_s8 = sshll.u32 %s1335_s10, 4  ;;  %s641_s8 = int_to_ptr.hbm [resolvable:$true] %s640_s8 }
  0x31   :  { %299 = vmatpush.bf16.msra.mxu1 %v887_v9  ;;  %459 = vmatpush.bf16.msra.mxu3 %v905_v32 }
  0x32   :  { %377 = vmatpush.bf16.msra.mxu2 %v896_v20 }
  0x34   :  { %217 = vmatpush.bf16.msra.mxu0 %v878_v10 }
  0x35   :  { %300 = vmatpush.bf16.msra.mxu1 %v886_v11  ;;  %460 = vmatpush.bf16.msra.mxu3 %v904_v33 }
  0x36   :  { %378 = vmatpush.bf16.msra.mxu2 %v895_v21 }
  0x38   :  { %218 = vmatpush.bf16.msra.mxu0 %v877_v12 }
  0x39   :  { %301 = vmatpush.bf16.msra.mxu1 %v885_v13  ;;  %461 = vmatpush.bf16.msra.mxu3 %v903_v34 }
  0x3a   :  { %379 = vmatpush.bf16.msra.mxu2 %v894_v22 }
  0x3c   :  { %219 = vmatpush.bf16.msra.mxu0 %v876_v14 }
  0x3d   :  { %302 = vmatpush.bf16.msra.mxu1 %v884_v16  ;;  %462 = vmatpush.bf16.msra.mxu3 %v902_v35 }
  0x3e   :  { %380 = vmatpush.bf16.msra.mxu2 %v893_v24 }
  0x3f   :  { %220 = vmatmul.bf16.vlgmr.msra.gmra.mxu0 %v147_v15 }
  0x40   :  { %536 = vmatpush.bf16.msrb.mxu0 %v915_v41 }
  0x41   :  { %463 = vmatpush.bf16.msra.mxu3 %v901_v36  ;;  %619 = vmatpush.bf16.msrb.mxu1 %v923_v54 }
  0x42   :  { %381 = vmatpush.bf16.msra.mxu2 %v892_v29 }
  0x44   :  { %537 = vmatpush.bf16.msrb.mxu0 %v914_v42 }
  0x45   :  { %464 = vmatpush.bf16.msra.mxu3 %v900_v40  ;;  %620 = vmatpush.bf16.msrb.mxu1 %v922_v55 }
  0x48   :  { %538 = vmatpush.bf16.msrb.mxu0 %v913_v43 }
  0x49   :  { %621 = vmatpush.bf16.msrb.mxu1 %v921_v56 }
  0x4c   :  { %539 = vmatpush.bf16.msrb.mxu0 %v912_v44 }
  0x4d   :  { %622 = vmatpush.bf16.msrb.mxu1 %v920_v57 }
  0x50   :  { %540 = vmatpush.bf16.msrb.mxu0 %v911_v45 }
  0x51   :  { %623 = vmatpush.bf16.msrb.mxu1 %v919_v58 }
  0x54   :  { %541 = vmatpush.bf16.msrb.mxu0 %v910_v46 }
  0x55   :  { %624 = vmatpush.bf16.msrb.mxu1 %v918_v59 }
  0x58   :  { %542 = vmatpush.bf16.msrb.mxu0 %v909_v48 }
  0x59   :  { %625 = vmatpush.bf16.msrb.mxu1 %v917_v60 }
  0x5c   :  { %543 = vmatpush.bf16.msrb.mxu0 %v908_v53 }
  0x5d   :  { %626 = vmatpush.bf16.msrb.mxu1 %v916_v0 }
  0xbc   :  { %v221_v25 = vpop.f32.mrf.mxu0 }
  0xbd   :  { %v229_v26 = vsub.f32 %v221_v25, %v936_v23 }
  0xbf   :  { %v230_v27 = vpack.c.bf16 %v229_v26, %v229_v26 }
  0xc1   :  { %303 = vmatmul.bf16.vlgmr.msra.gmra.mxu1 %v230_v27 }
  0xc4   :  { %v223_v28 = vpop.f32.mrf.mxu0 }
 0x13e   :  { %v304_v37 = vpop.f32.mrf.mxu1 }
 0x13f   :  { %308 = vst [vmem:[#allocation14] sm:$0xff] %v304_v37  ;;  %v309_v38 = vpack.c.bf16 %v304_v37, %v304_v37 }
 0x140   :  { %643 = dma.vmem_to_hbm [thread:$0]  %s639_s22, 128, %s641_s8, [#allocation4]  }
 0x141   :  { %382 = vmatmul.bf16.vlgmr.msra.gmra.mxu2 %v309_v38 }
 0x146   :  { %v306_v39 = vpop.f32.mrf.mxu1 }
 0x1c4   :  { %v383_v49 = vpop.f32.mrf.mxu2 }
 0x1c5   :  { %v391_v50 = vsub.f32 %v383_v49, %v937_v47 }
 0x1c7   :  { %v392_v51 = vpack.c.bf16 %v391_v50, %v391_v50 }
 0x1c9   :  { %465 = vmatmul.bf16.vlgmr.msra.gmra.mxu3 %v392_v51 }
 0x1cc   :  { %v385_v52 = vpop.f32.mrf.mxu2 }
 0x24c   :  { %v466_v61 = vpop.f32.mrf.mxu3 }
 0x24d   :  { %470 = vst [vmem:[#allocation15] sm:$0xff] %v466_v61  ;;  %v471_v62 = vpack.c.bf16 %v466_v61, %v466_v61 }
 0x24e   :  { %654 = dma.vmem_to_hbm [thread:$0]  %s650_s21, 128, %s652_s19, [#allocation16]  }
 0x24f   :  { %544 = vmatmul.bf16.vlgmr.msrb.gmra.mxu0 %v471_v62 }
 0x254   :  { %v468_v63 = vpop.f32.mrf.mxu3 }
 0x2cc   :  { %v545_v2 = vpop.f32.mrf.mxu0 }
 0x2cd   :  { %v553_v3 = vsub.f32 %v545_v2, %v938_v1 }
 0x2cf   :  { %v554_v4 = vpack.c.bf16 %v553_v3, %v553_v3 }
 0x2d1   :  { %627 = vmatmul.bf16.vlgmr.msrb.gmra.mxu1 %v554_v4 }
 0x2d4   :  { %v547_v5 = vpop.f32.mrf.mxu0 }
 0x34e   :  { %v628_v6 = vpop.f32.mrf.mxu1 }
 0x34f   :  { %632 = vst [vmem:[#allocation17] sm:$0xff] %v628_v6 }
 0x350   :  { %665 = dma.vmem_to_hbm [thread:$0]  %s661_s26, 128, %s663_s27, [#allocation16]  }
 0x356   :  { %v630_v7 = vpop.f32.mrf.mxu1 }
 0x357   :  { %1187 = dma.done.wait [#allocation4], 128  }
 0x358   :  { %1188 = vsyncadd [#allocation4], 4294967168 }
 0x359   :  { %1189 = dma.done.wait [#allocation16], 256  }
 0x35a   :  { %1190 = vsyncadd [#allocation16], 4294967040 }
 0x35b   :  { %678 = vsyncpa [#allocation3], 1 }
 0x35c   :  { %679 = vsyncpa [#allocation6], 1 }
 0x35d   :  { %680 = vsyncpa [#allocation9], 1 }
 0x35e   :  { %681 = vsyncpa [#allocation12], 1 }
 0x35f   :  { %682 = vsyncpa [#allocation4], 1 }
 0x360   :  { %683 = vsyncpa [#allocation16], 1 }

</bundles_post_ra>
